<compile_context>
chip_gen: v5e
topology: v5e:2x2
jax: 0.10.0
libtpu: 0.0.40
codegen_flags: <defaults>
</compile_context>

<pallas_src>
import jax
import jax.numpy as jnp
from jax.experimental import pallas as pl
from jax.experimental.pallas import tpu as pltpu


def _make_noise_kernel(mean: float, std: float, tile_m: int, lanes: int):
    inv_2p23 = 1.0 / 8388608.0  # 2^-23
    mix = -1640531527           # 0x9E3779B9 as signed int32 (int32 arithmetic wraps)

    def kernel(seed_ref, x_ref, o_ref):
        # ---- per-element counter: global element index + seed mix ----
        # Fold the tile offset and the seed mix into one scalar (scalar unit) before
        # broadcasting into the vector domain.
        base = pl.program_id(0) * (tile_m * lanes) + seed_ref[0] * mix
        row = jax.lax.broadcasted_iota(jnp.int32, (tile_m, lanes), 0)
        col = jax.lax.broadcasted_iota(jnp.int32, (tile_m, lanes), 1)
        ctr = row * lanes + col + base

        # ---- lowbias32 avalanche hash (uint32 bit ops, VALU) ----
        h = ctr.astype(jnp.uint32)
        h = h ^ (h >> 16)
        h = h * jnp.uint32(0x7FEB352D)
        h = h ^ (h >> 15)
        h = h * jnp.uint32(0x846CA68B)
        h = h ^ (h >> 16)

        # ---- uniform in (0,1) from the top 23 bits ----
        bits = (h >> 9).astype(jnp.int32)                 # value in [0, 2^23)
        u = (bits.astype(jnp.float32) + 0.5) * inv_2p23   # strictly inside (0, 1)

        # ---- standard normal via inverse CDF (A&S 26.2.23, |err| < 4.5e-4) ----
        p = jnp.minimum(u, 1.0 - u)
        t = jnp.sqrt(-2.0 * jnp.log(p))                   # log on the EUP
        num = 2.515517 + t * (0.802853 + t * 0.010328)
        den = 1.0 + t * (1.432788 + t * (0.189269 + t * 0.001308))
        # Approx reciprocal on the EUP instead of an exact VALU divide.
        z = t - num * pl.reciprocal(den, approx=True)
        z = jnp.where(u < 0.5, -z, z)

        noise = std * z + mean  # f32

        x_val = x_ref[...]
        if x_val.dtype == jnp.float32:
            o_ref[...] = x_val + noise
        else:
            # Add in f32, cast the sum once: avoids quantizing the noise to bf16
            # before the add; same or fewer ops on every generation.
            o_ref[...] = (x_val.astype(jnp.float32) + noise).astype(o_ref.dtype)

    return kernel


def normal_noise(x, *, mean: float, std: float, seed: int, training: bool = True):
    """JAX/Pallas port of kompil NormalNoise.forward.

    training=True : returns x + noise, noise ~ N(mean, std), same shape/dtype as x.
                    Noise is deterministic per seed — callers should thread a fresh
                    seed each step to match torch.normal drawing fresh noise per call.
    training=False: returns x unchanged (identity).
    """
    if not training:
        return x

    orig_shape = x.shape
    total = x.size
    if total == 0:
        return x

    # Lane width: largest of 512/256/128 that divides the element count, so the
    # flatten->2D reshape is free (no pad copy) and every store is a full-width vst.
    lanes = None
    for cand in (512, 256, 128):
        if total % cand == 0:
            lanes = cand
            break

    pad = 0
    if lanes is None:
        # TODO(synk): element counts that are not a multiple of 128 fall back to a
        # pad+slice copy (extra HBM traffic); rare for NCHW activation tensors.
        lanes = 128
        rows = pl.cdiv(total, lanes)
        pad = rows * lanes - total
    else:
        rows = total // lanes

    xf = x.reshape(-1)
    if pad:
        xf = jnp.pad(xf, (0, pad))
    x2 = xf.reshape(rows, lanes)

    # Row tiling: <=1024 rows (~2 MiB f32 tiles; in+out double-buffered ~8 MiB, under
    # v5e's 16 MiB scoped-VMEM default) and, when there is enough work, at least two
    # grid steps so the "parallel" axis can shard across v7x's two TensorCores.
    if rows <= 16:
        tile_m = rows                                   # single full-array block
    else:
        half = pl.cdiv(rows, 2)
        tile_m = min(1024, ((half + 7) // 8) * 8)       # multiple of 8 sublanes
    grid = (pl.cdiv(rows, tile_m),)                     # ragged last block is masked

    seed_arr = jnp.asarray([seed], dtype=jnp.int32)

    out2 = pl.pallas_call(
        _make_noise_kernel(float(mean), float(std), tile_m, lanes),
        out_shape=jax.ShapeDtypeStruct((rows, lanes), x.dtype),
        grid_spec=pltpu.PrefetchScalarGridSpec(
            num_scalar_prefetch=1,
            grid=grid,
            # index_maps receive the scalar-prefetch ref positionally.
            in_specs=[pl.BlockSpec((tile_m, lanes), lambda i, seed_ref: (i, 0))],
            out_specs=pl.BlockSpec((tile_m, lanes), lambda i, seed_ref: (i, 0)),
        ),
        compiler_params=pltpu.CompilerParams(
            # Elementwise and independent per tile -> shard across TensorCores (v7x).
            dimension_semantics=("parallel",),
        ),
        # Alias the tensor input (arg 1; seed is arg 0) to the output: with the pad
        # copy removed this genuinely donates the caller's buffer inside larger jitted
        # graphs and avoids a second full-size HBM allocation.
        input_output_aliases={1: 0},
    )(seed_arr, x2)

    out = out2.reshape(-1)
    if pad:
        out = out[:total]
    return out.reshape(orig_shape)


if __name__ == "__main__":
    key = jax.random.PRNGKey(0)
    # NCHW, small shapes: batch=2, channels=4, spatial=16x16
    x = jax.random.normal(key, (2, 4, 16, 16), dtype=jnp.float32)

    MEAN, STD = 0.5, 0.1

    # training mode: x + N(mean, std)
    y_train = jax.block_until_ready(
        normal_noise(x, mean=MEAN, std=STD, seed=1234, training=True)
    )

    # eval mode: identity (no kernel launch)
    y_eval = jax.block_until_ready(
        normal_noise(x, mean=MEAN, std=STD, seed=1234, training=False)
    )

    # Sanity checks.
    assert y_train.shape == x.shape and y_train.dtype == x.dtype
    assert bool(jnp.all(y_eval == x))
    diff = y_train - x  # should be ~ N(MEAN, STD)
    emp_mean = float(jnp.mean(diff))
    emp_std = float(jnp.std(diff))
    assert abs(emp_mean - MEAN) < 0.05, f"noise mean off: {emp_mean}"
    assert abs(emp_std - STD) < 0.05, f"noise std off: {emp_std}"

    print("KERNEL_OK")
</pallas_src>

<mosaic_0001>
module attributes {stable_mosaic.version = 11 : i64} {
  func.func @kernel(%arg0: i32, %arg1: memref<1xi32, #tpu.memory_space<smem>>, %arg2: memref<4x512xf32, #tpu.memory_space<vmem>>, %arg3: memref<4x512xf32, #tpu.memory_space<vmem>>) attributes {dimension_semantics = [#tpu.dimension_semantics<parallel>], iteration_bounds = array<i64: 1>, scalar_prefetch = 1 : i64, scratch_operands = 0 : i64, tpu.core_type = #tpu.core_type<tc>, window_params = [{transform_indices = @transform_0, window_bounds = array<i64: 4, 512>}, {transform_indices = @transform_1, window_bounds = array<i64: 4, 512>}]} {
    %c2048_i32 = arith.constant 2048 : i32
    %0 = arith.muli %arg0, %c2048_i32 : i32
    %c0 = arith.constant 0 : index
    %1 = memref.load %arg1[%c0] : memref<1xi32, #tpu.memory_space<smem>>
    %c-1640531527_i32 = arith.constant -1640531527 : i32
    %2 = arith.muli %1, %c-1640531527_i32 : i32
    %3 = arith.addi %0, %2 : i32
    %4 = tpu.iota {dimensions = array<i32: 0>} : vector<4x512xi32>
    %5 = tpu.iota {dimensions = array<i32: 1>} : vector<4x512xi32>
    %c512_i32 = arith.constant 512 : i32
    %6 = vector.broadcast %c512_i32 : i32 to vector<4x512xi32>
    %7 = arith.muli %4, %6 : vector<4x512xi32>
    %8 = arith.addi %7, %5 : vector<4x512xi32>
    %9 = vector.broadcast %3 : i32 to vector<4x512xi32>
    %10 = arith.addi %8, %9 : vector<4x512xi32>
    %c16_i32 = arith.constant 16 : i32
    %11 = vector.broadcast %c16_i32 : i32 to vector<4x512xi32>
    %12 = arith.shrui %10, %11 : vector<4x512xi32>
    %13 = arith.xori %10, %12 : vector<4x512xi32>
    %c2146121005_i32 = arith.constant 2146121005 : i32
    %14 = vector.broadcast %c2146121005_i32 : i32 to vector<4x512xi32>
    %15 = arith.muli %13, %14 : vector<4x512xi32>
    %c15_i32 = arith.constant 15 : i32
    %16 = vector.broadcast %c15_i32 : i32 to vector<4x512xi32>
    %17 = arith.shrui %15, %16 : vector<4x512xi32>
    %18 = arith.xori %15, %17 : vector<4x512xi32>
    %c-2073254261_i32 = arith.constant -2073254261 : i32
    %19 = vector.broadcast %c-2073254261_i32 : i32 to vector<4x512xi32>
    %20 = arith.muli %18, %19 : vector<4x512xi32>
    %c16_i32_0 = arith.constant 16 : i32
    %21 = vector.broadcast %c16_i32_0 : i32 to vector<4x512xi32>
    %22 = arith.shrui %20, %21 : vector<4x512xi32>
    %23 = arith.xori %20, %22 : vector<4x512xi32>
    %c9_i32 = arith.constant 9 : i32
    %24 = vector.broadcast %c9_i32 : i32 to vector<4x512xi32>
    %25 = arith.shrui %23, %24 : vector<4x512xi32>
    %26 = arith.sitofp %25 : vector<4x512xi32> to vector<4x512xf32>
    %cst = arith.constant 5.000000e-01 : f32
    %27 = vector.broadcast %cst : f32 to vector<4x512xf32>
    %28 = arith.addf %26, %27 : vector<4x512xf32>
    %cst_1 = arith.constant 1.1920929E-7 : f32
    %29 = vector.broadcast %cst_1 : f32 to vector<4x512xf32>
    %30 = arith.mulf %28, %29 : vector<4x512xf32>
    %cst_2 = arith.constant 1.000000e+00 : f32
    %31 = vector.broadcast %cst_2 : f32 to vector<4x512xf32>
    %32 = arith.subf %31, %30 : vector<4x512xf32>
    %33 = arith.minimumf %30, %32 : vector<4x512xf32>
    %34 = math.log %33 : vector<4x512xf32>
    %cst_3 = arith.constant -2.000000e+00 : f32
    %35 = vector.broadcast %cst_3 : f32 to vector<4x512xf32>
    %36 = arith.mulf %35, %34 : vector<4x512xf32>
    %37 = math.sqrt %36 : vector<4x512xf32>
    %cst_4 = arith.constant 1.032800e-02 : f32
    %38 = vector.broadcast %cst_4 : f32 to vector<4x512xf32>
    %39 = arith.mulf %37, %38 : vector<4x512xf32>
    %cst_5 = arith.constant 0.802852988 : f32
    %40 = vector.broadcast %cst_5 : f32 to vector<4x512xf32>
    %41 = arith.addf %40, %39 : vector<4x512xf32>
    %42 = arith.mulf %37, %41 : vector<4x512xf32>
    %cst_6 = arith.constant 2.515517 : f32
    %43 = vector.broadcast %cst_6 : f32 to vector<4x512xf32>
    %44 = arith.addf %43, %42 : vector<4x512xf32>
    %cst_7 = arith.constant 1.308000e-03 : f32
    %45 = vector.broadcast %cst_7 : f32 to vector<4x512xf32>
    %46 = arith.mulf %37, %45 : vector<4x512xf32>
    %cst_8 = arith.constant 1.892690e-01 : f32
    %47 = vector.broadcast %cst_8 : f32 to vector<4x512xf32>
    %48 = arith.addf %47, %46 : vector<4x512xf32>
    %49 = arith.mulf %37, %48 : vector<4x512xf32>
    %cst_9 = arith.constant 1.43278801 : f32
    %50 = vector.broadcast %cst_9 : f32 to vector<4x512xf32>
    %51 = arith.addf %50, %49 : vector<4x512xf32>
    %52 = arith.mulf %37, %51 : vector<4x512xf32>
    %cst_10 = arith.constant 1.000000e+00 : f32
    %53 = vector.broadcast %cst_10 : f32 to vector<4x512xf32>
    %54 = arith.addf %53, %52 : vector<4x512xf32>
    %55 = tpu.reciprocal %54 {approx = true} : vector<4x512xf32> -> vector<4x512xf32>
    %56 = arith.mulf %44, %55 : vector<4x512xf32>
    %57 = arith.subf %37, %56 : vector<4x512xf32>
    %cst_11 = arith.constant 5.000000e-01 : f32
    %58 = vector.broadcast %cst_11 : f32 to vector<4x512xf32>
    %59 = arith.cmpf olt, %30, %58 : vector<4x512xf32>
    %cst_12 = arith.constant 0.000000e+00 : f32
    %60 = vector.broadcast %cst_12 : f32 to vector<4x512xf32>
    %61 = arith.subf %60, %57 : vector<4x512xf32>
    %62 = arith.select %59, %61, %57 : vector<4x512xi1>, vector<4x512xf32>
    %cst_13 = arith.constant 1.000000e-01 : f32
    %63 = vector.broadcast %cst_13 : f32 to vector<4x512xf32>
    %64 = arith.mulf %63, %62 : vector<4x512xf32>
    %cst_14 = arith.constant 5.000000e-01 : f32
    %65 = vector.broadcast %cst_14 : f32 to vector<4x512xf32>
    %66 = arith.addf %64, %65 : vector<4x512xf32>
    %c0_15 = arith.constant 0 : index
    %c0_16 = arith.constant 0 : index
    %67 = vector.load %arg2[%c0_15, %c0_16] : memref<4x512xf32, #tpu.memory_space<vmem>>, vector<4x512xf32>
    %68 = arith.addf %67, %66 : vector<4x512xf32>
    %c0_17 = arith.constant 0 : index
    %c0_18 = arith.constant 0 : index
    %69 = vector.load %arg3[%c0_17, %c0_18] : memref<4x512xf32, #tpu.memory_space<vmem>>, vector<4x512xf32>
    tpu.vector_store %arg3[%c0_17, %c0_18], %68 {strides = array<i32>} : memref<4x512xf32, #tpu.memory_space<vmem>>, vector<4x512xf32>,
    return
  }
  func.func @transform_0(%arg0: i32, %arg1: memref<1xi32, #tpu.memory_space<smem>>) -> (i32, i32) {
    %c0_i32 = arith.constant 0 : i32
    %c0_i32_0 = arith.constant 0 : i32
    return %arg0, %c0_i32 : i32, i32
  }
  func.func @transform_1(%arg0: i32, %arg1: memref<1xi32, #tpu.memory_space<smem>>) -> (i32, i32) {
    %c0_i32 = arith.constant 0 : i32
    %c0_i32_0 = arith.constant 0 : i32
    return %arg0, %c0_i32 : i32, i32
  }
}

</mosaic_0001>

<bundles_post_ra>
// kernel: tpu_custom_call.1
= control target key start
LH: loop header
LB: loop body
LE: loop exit
PB: predicated region body
PF: predicated region fallthrough
CT: control target
= control target key end

     0   :  { %8 = vsyncpa [#allocation5], 0  ;;  %s395_s0 = inlined_call_operand.<no memory space> [shape: s32[1], index: 0, kind: input, shape index: {}]   ;;  %s396_s1 = inlined_call_operand.hbm [shape: f32[4,512], index: 1, kind: input, shape index: {}, may-alias: {1,2}]   ;;  %s397_s2 = inlined_call_operand.hbm [shape: f32[4,512], index: 2, kind: output, shape index: {}, may-alias: {1,2}]  }
   0x1   :  { %9 = vsyncpa [#allocation6], 0  ;;  %s15_s11 = sshll.u32 %s396_s1, 4  ;;  %s346_s12 = smov [#allocation4]   ;;  %s16_s11 = int_to_ptr.hbm [resolvable:$true] %s15_s11 }
   0x2   :  { %s17_s13 = sshll.u32 %s346_s12, 4  ;;  %s18_s13 = int_to_ptr.vmem [resolvable:$true] %s17_s13 }
   0x3   :  { %20 = dma.hbm_to_vmem [thread:$0]  %s16_s11, 256, %s18_s13, [#allocation5]  }
   0x4   :  { %342 = dma.done.wait [#allocation5], 256  }
   0x5   :  { %343 = vsyncadd [#allocation5], 4294967040  ;;  %v29_v0 = vlaneseq  ;;  %s27_s16 = smul.u32 2654435769, %s395_s0  ;;  %vm242_vm11 = vcmask 1043456   ;;  %s347_s0 = smov [#allocation7]  }
   0x6   :  { %s256_s1 = sshll.u32 %s347_s0, 4  ;;  %s258_s19 = sshll.u32 %s397_s2, 4  ;;  %s257_s1 = int_to_ptr.vmem [resolvable:$true] %s256_s1  ;;  %s259_s19 = int_to_ptr.hbm [resolvable:$true] %s258_s19 }
   0x7   :  { %v30_v1 = vshrl.u32 %v29_v0, 7  ;;  %v32_v2 = vand.u32 127, %v29_v0  ;;  %v41_v7 = vstv %s27_s16 }
   0x9   :  { %v33_v3 = vadd.s32 128, %v32_v2  ;;  %v36_v4 = vmul.u32 512, %v30_v1  ;;  %v34_v5 = vadd.s32 256, %v32_v2  ;;  %v35_v6 = vadd.s32 384, %v32_v2 }
   0xb   :  { %v37_v8 = vadd.s32 %v36_v4, %v32_v2  ;;  %v38_v9 = vadd.s32 %v36_v4, %v33_v3  ;;  %v39_v10 = vadd.s32 %v36_v4, %v34_v5  ;;  %v40_v11 = vadd.s32 %v36_v4, %v35_v6 }
   0xd   :  { %v42_v12 = vadd.s32 %v41_v7, %v37_v8  ;;  %v43_v13 = vadd.s32 %v41_v7, %v38_v9  ;;  %v44_v14 = vadd.s32 %v41_v7, %v39_v10  ;;  %v45_v15 = vadd.s32 %v41_v7, %v40_v11 }
   0xf   :  { %v46_v16 = vshrl.u32 %v42_v12, 16  ;;  %v47_v17 = vshrl.u32 %v43_v13, 16  ;;  %v48_v18 = vshrl.u32 %v44_v14, 16  ;;  %v49_v19 = vshrl.u32 %v45_v15, 16 }
  0x11   :  { %v50_v20 = vxor.u32 %v46_v16, %v42_v12  ;;  %v51_v21 = vxor.u32 %v47_v17, %v43_v13  ;;  %v52_v22 = vxor.u32 %v48_v18, %v44_v14  ;;  %v53_v23 = vxor.u32 %v49_v19, %v45_v15 }
  0x13   :  { %v54_v24 = vmul.u32 2146121005, %v50_v20  ;;  %v55_v25 = vmul.u32 2146121005, %v51_v21  ;;  %v56_v26 = vmul.u32 2146121005, %v52_v22 }
  0x14   :  { %v57_v27 = vmul.u32 2146121005, %v53_v23 }
  0x15   :  { %v58_v28 = vshrl.u32 %v54_v24, 15  ;;  %v59_v29 = vshrl.u32 %v55_v25, 15  ;;  %v60_v30 = vshrl.u32 %v56_v26, 15 }
  0x16   :  { %v61_v31 = vshrl.u32 %v57_v27, 15 }
  0x17   :  { %v62_v32 = vxor.u32 %v58_v28, %v54_v24  ;;  %v63_v33 = vxor.u32 %v59_v29, %v55_v25  ;;  %v64_v34 = vxor.u32 %v60_v30, %v56_v26 }
  0x18   :  { %v65_v35 = vxor.u32 %v61_v31, %v57_v27 }
  0x19   :  { %v66_v36 = vmul.u32 2221713035, %v62_v32  ;;  %v67_v37 = vmul.u32 2221713035, %v63_v33  ;;  %v68_v38 = vmul.u32 2221713035, %v64_v34 }
  0x1a   :  { %v69_v39 = vmul.u32 2221713035, %v65_v35 }
  0x1b   :  { %v70_v40 = vshrl.u32 %v66_v36, 16  ;;  %v71_v41 = vshrl.u32 %v67_v37, 16  ;;  %v72_v42 = vshrl.u32 %v68_v38, 16 }
  0x1c   :  { %v73_v43 = vshrl.u32 %v69_v39, 16 }
  0x1d   :  { %v74_v44 = vxor.u32 %v70_v40, %v66_v36  ;;  %v75_v45 = vxor.u32 %v71_v41, %v67_v37  ;;  %v76_v46 = vxor.u32 %v72_v42, %v68_v38 }
  0x1e   :  { %v77_v47 = vxor.u32 %v73_v43, %v69_v39 }
  0x1f   :  { %v78_v48 = vshrl.u32 %v74_v44, 9  ;;  %v79_v49 = vshrl.u32 %v75_v45, 9  ;;  %v80_v50 = vshrl.u32 %v76_v46, 9 }
  0x20   :  { %v81_v51 = vshrl.u32 %v77_v47, 9 }
  0x21   :  { %v82_v52 = vcvt.s32.f32 %v78_v48  ;;  %v83_v53 = vcvt.s32.f32 %v79_v49  ;;  %v84_v54 = vcvt.s32.f32 %v80_v50 }
  0x22   :  { %v85_v55 = vcvt.s32.f32 %v81_v51 }
  0x23   :  { %v86_v56 = vadd.f32 0.5, %v82_v52  ;;  %v87_v57 = vadd.f32 0.5, %v83_v53  ;;  %v88_v58 = vadd.f32 0.5, %v84_v54 }
  0x24   :  { %v89_v59 = vadd.f32 0.5, %v85_v55 }
  0x25   :  { %v369_v60 = vmul.f32 1.1920929e-07, %v86_v56  ;;  %v371_v61 = vmul.f32 1.1920929e-07, %v87_v57  ;;  %v373_v62 = vmul.f32 1.1920929e-07, %v88_v58 }
  0x26   :  { %v375_v63 = vmul.f32 1.1920929e-07, %v89_v59 }
  0x27   :  { %v94_v0 = vsub.f32 1.0, %v369_v60  ;;  %v95_v1 = vsub.f32 1.0, %v371_v61  ;;  %v96_v2 = vsub.f32 1.0, %v373_v62  ;;  %vm214_vm8 = vcmp.lt.f32.partialorder %v369_v60, 0.5 }
  0x28   :  { %v97_v3 = vsub.f32 1.0, %v375_v63  ;;  %vm215_vm9 = vcmp.lt.f32.partialorder %v371_v61, 0.5  ;;  %vm216_vm10 = vcmp.lt.f32.partialorder %v373_v62, 0.5  ;;  %vm217_vm12 = vcmp.lt.f32.partialorder %v375_v63, 0.5 }
  0x29   :  { %v98_v4 = vmin.f32 %v369_v60, %v94_v0  ;;  %v99_v5 = vmin.f32 %v371_v61, %v95_v1  ;;  %v100_v6 = vmin.f32 %v373_v62, %v96_v2  ;;  %v234_v61 = vld [vmem:[#allocation4] sm:$0xff] }
  0x2a   :  { %v101_v7 = vmin.f32 %v375_v63, %v97_v3 }
  0x2b   :  { %270 = vlog2.f32 %v98_v4 }
  0x2c   :  { %272 = vlog2.f32 %v99_v5 }
  0x2d   :  { %274 = vlog2.f32 %v100_v6 }
  0x2e   :  { %276 = vlog2.f32 %v101_v7 }
  0x31   :  { %v271_v8 = vpop.eup %270 }
  0x32   :  { %v273_v9 = vpop.eup %272  ;;  %v103_v10 = vmul.f32 0.6931472, %v271_v8 }
  0x33   :  { %v275_v11 = vpop.eup %274  ;;  %v105_v12 = vmul.f32 0.6931472, %v273_v9 }
  0x34   :  { %v277_v13 = vpop.eup %276  ;;  %v110_v14 = vmul.f32 -2.0, %v103_v10  ;;  %v107_v15 = vmul.f32 0.6931472, %v275_v11 }
  0x35   :  { %v111_v16 = vmul.f32 -2.0, %v105_v12  ;;  %v109_v17 = vmul.f32 0.6931472, %v277_v13 }
  0x36   :  { %278 = vrsqrt.f32 %v110_v14  ;;  %v112_v18 = vmul.f32 -2.0, %v107_v15  ;;  %vm121_vm0 = vcmp.eq.f32.partialorder %v110_v14, inf  ;;  %vm123_vm1 = vcmp.eq.f32.partialorder %v110_v14, 0.0 }
  0x37   :  { %280 = vrsqrt.f32 %v111_v16  ;;  %v113_v19 = vmul.f32 -2.0, %v109_v17  ;;  %v124_v38 = vand.u32 2147483648, %v110_v14  ;;  %vm133_vm2 = vcmp.eq.f32.partialorder %v111_v16, inf }
  0x38   :  { %282 = vrsqrt.f32 %v112_v18  ;;  %v136_v42 = vand.u32 2147483648, %v111_v16  ;;  %vm135_vm3 = vcmp.eq.f32.partialorder %v111_v16, 0.0  ;;  %vm145_vm4 = vcmp.eq.f32.partialorder %v112_v18, inf }
  0x39   :  { %284 = vrsqrt.f32 %v113_v19  ;;  %vm147_vm5 = vcmp.eq.f32.partialorder %v112_v18, 0.0  ;;  %v148_v50 = vand.u32 2147483648, %v112_v18  ;;  %vm157_vm6 = vcmp.eq.f32.partialorder %v113_v19, inf }
  0x3a   :  { %v160_v57 = vand.u32 2147483648, %v113_v19  ;;  %vm159_vm7 = vcmp.eq.f32.partialorder %v113_v19, 0.0 }
  0x3c   :  { %v279_v20 = vpop.eup %278 }
  0x3d   :  { %v281_v21 = vpop.eup %280  ;;  %v115_v22 = vmul.f32 %v279_v20, %v110_v14 }
  0x3e   :  { %v127_v23 = vmul.f32 %v281_v21, %v111_v16  ;;  %v283_v25 = vpop.eup %282 }
  0x3f   :  { %v116_v24 = vmul.f32 %v279_v20, %v115_v22  ;;  %v285_v27 = vpop.eup %284  ;;  %v139_v29 = vmul.f32 %v283_v25, %v112_v18 }
  0x40   :  { %v128_v26 = vmul.f32 %v281_v21, %v127_v23  ;;  %v151_v31 = vmul.f32 %v285_v27, %v113_v19 }
  0x41   :  { %v117_v28 = vmul.f32 0.5, %v116_v24  ;;  %v140_v33 = vmul.f32 %v283_v25, %v139_v29 }
  0x42   :  { %v129_v30 = vmul.f32 0.5, %v128_v26  ;;  %v152_v35 = vmul.f32 %v285_v27, %v151_v31 }
  0x43   :  { %v118_v32 = vsub.f32 1.5, %v117_v28  ;;  %v141_v37 = vmul.f32 0.5, %v140_v33 }
  0x44   :  { %v130_v34 = vsub.f32 1.5, %v129_v30  ;;  %v153_v40 = vmul.f32 0.5, %v152_v35 }
  0x45   :  { %v119_v36 = vmul.f32 %v279_v20, %v118_v32  ;;  %v142_v43 = vsub.f32 1.5, %v141_v37 }
  0x46   :  { %v131_v39 = vmul.f32 %v281_v21, %v130_v34  ;;  %v154_v45 = vsub.f32 1.5, %v153_v40 }
  0x47   :  { %v120_v41 = vmul.f32 %v119_v36, %v110_v14  ;;  %v143_v47 = vmul.f32 %v283_v25, %v142_v43 }
  0x48   :  { %v132_v44 = vmul.f32 %v131_v39, %v111_v16  ;;  %v155_v51 = vmul.f32 %v285_v27, %v154_v45 }
  0x49   :  { %v122_v46 = vsel %vm121_vm0, %v110_v14, %v120_v41  ;;  %v144_v54 = vmul.f32 %v143_v47, %v112_v18 }
  0x4a   :  { %v125_v48 = vsel %vm123_vm1, %v124_v38, %v122_v46  ;;  %v134_v49 = vsel %vm133_vm2, %v111_v16, %v132_v44  ;;  %v156_v56 = vmul.f32 %v155_v51, %v113_v19 }
  0x4b   :  { %v137_v52 = vsel %vm135_vm3, %v136_v42, %v134_v49  ;;  %v178_v53 = vmul.f32 0.001308, %v125_v48  ;;  %v146_v59 = vsel %vm145_vm4, %v112_v18, %v144_v54  ;;  %v162_v0 = vmul.f32 0.010328, %v125_v48 }
  0x4c   :  { %v179_v55 = vmul.f32 0.001308, %v137_v52  ;;  %v149_v2 = vsel %vm147_vm5, %v148_v50, %v146_v59  ;;  %v158_v3 = vsel %vm157_vm6, %v113_v19, %v156_v56  ;;  %v163_v4 = vmul.f32 0.010328, %v137_v52 }
  0x4d   :  { %v182_v58 = vadd.f32 0.189269, %v178_v53  ;;  %v161_v7 = vsel %vm159_vm7, %v160_v57, %v158_v3  ;;  %v180_v8 = vmul.f32 0.001308, %v149_v2  ;;  %v166_v10 = vadd.f32 0.802853, %v162_v0 }
  0x4e   :  { %v183_v1 = vadd.f32 0.189269, %v179_v55  ;;  %v167_v12 = vadd.f32 0.802853, %v163_v4  ;;  %v181_v14 = vmul.f32 0.001308, %v161_v7 }
  0x4f   :  { %v186_v5 = vmul.f32 %v182_v58, %v125_v48  ;;  %v184_v15 = vadd.f32 0.189269, %v180_v8  ;;  %v164_v17 = vmul.f32 0.010328, %v149_v2  ;;  %v170_v18 = vmul.f32 %v166_v10, %v125_v48  ;;  %v235_v10 = vld [vmem:[#allocation4 + $0x8] sm:$0xff] }
  0x50   :  { %v187_v6 = vmul.f32 %v183_v1, %v137_v52  ;;  %v185_v21 = vadd.f32 0.189269, %v181_v14  ;;  %v165_v19 = vmul.f32 0.010328, %v161_v7  ;;  %v171_v24 = vmul.f32 %v167_v12, %v137_v52 }
  0x51   :  { %v190_v9 = vadd.f32 1.432788, %v186_v5  ;;  %v188_v22 = vmul.f32 %v184_v15, %v149_v2  ;;  %v168_v27 = vadd.f32 0.802853, %v164_v17  ;;  %v174_v30 = vadd.f32 2.515517, %v170_v18 }
  0x52   :  { %v191_v11 = vadd.f32 1.432788, %v187_v6  ;;  %v189_v25 = vmul.f32 %v185_v21, %v161_v7  ;;  %v169_v31 = vadd.f32 0.802853, %v165_v19  ;;  %v175_v32 = vadd.f32 2.515517, %v171_v24 }
  0x53   :  { %v194_v13 = vmul.f32 %v190_v9, %v125_v48  ;;  %v192_v26 = vadd.f32 1.432788, %v188_v22  ;;  %v172_v35 = vmul.f32 %v168_v27, %v149_v2 }
  0x54   :  { %v195_v16 = vmul.f32 %v191_v11, %v137_v52  ;;  %v193_v28 = vadd.f32 1.432788, %v189_v25  ;;  %v173_v40 = vmul.f32 %v169_v31, %v161_v7 }
  0x55   :  { %v198_v20 = vadd.f32 1.0, %v194_v13  ;;  %v196_v29 = vmul.f32 %v192_v26, %v149_v2  ;;  %v176_v43 = vadd.f32 2.515517, %v172_v35 }
  0x56   :  { %v199_v23 = vadd.f32 1.0, %v195_v16  ;;  %v197_v33 = vmul.f32 %v193_v28, %v161_v7  ;;  %v177_v46 = vadd.f32 2.515517, %v173_v40 }
  0x57   :  { %286 = vrcp.f32 %v198_v20  ;;  %v200_v34 = vadd.f32 1.0, %v196_v29 }
  0x58   :  { %288 = vrcp.f32 %v199_v23  ;;  %v201_v37 = vadd.f32 1.0, %v197_v33 }
  0x59   :  { %290 = vrcp.f32 %v200_v34 }
  0x5a   :  { %292 = vrcp.f32 %v201_v37 }
  0x5d   :  { %v287_v36 = vpop.eup %286 }
  0x5e   :  { %v289_v38 = vpop.eup %288  ;;  %v206_v39 = vmul.f32 %v287_v36, %v174_v30 }
  0x5f   :  { %v207_v41 = vmul.f32 %v289_v38, %v175_v32  ;;  %v291_v47 = vpop.eup %290 }
  0x60   :  { %v210_v42 = vsub.f32 %v125_v48, %v206_v39  ;;  %v208_v51 = vmul.f32 %v291_v47, %v176_v43  ;;  %v293_v53 = vpop.eup %292 }
  0x61   :  { %v211_v44 = vsub.f32 %v137_v52, %v207_v41  ;;  %v209_v57 = vmul.f32 %v293_v53, %v177_v46 }
  0x62   :  { %v218_v45 = vsub.f32 0.0, %v210_v42  ;;  %v212_v58 = vsub.f32 %v149_v2, %v208_v51 }
  0x63   :  { %v219_v49 = vsub.f32 0.0, %v211_v44  ;;  %v213_v59 = vsub.f32 %v161_v7, %v209_v57 }
  0x64   :  { %v222_v50 = vsel %vm214_vm8, %v218_v45, %v210_v42  ;;  %v220_v60 = vsub.f32 0.0, %v212_v58 }
  0x65   :  { %v223_v54 = vsel %vm215_vm9, %v219_v49, %v211_v44  ;;  %v226_v55 = vmul.f32 0.1, %v222_v50  ;;  %v221_v1 = vsub.f32 0.0, %v213_v59 }
  0x66   :  { %v227_v56 = vmul.f32 0.1, %v223_v54  ;;  %v224_v3 = vsel %vm216_vm10, %v220_v60, %v212_v58 }
  0x67   :  { %v230_v48 = vadd.f32 0.5, %v226_v55  ;;  %v228_v4 = vmul.f32 0.1, %v224_v3  ;;  %v225_v6 = vsel %vm217_vm12, %v221_v1, %v213_v59 }
  0x68   :  { %v231_v52 = vadd.f32 0.5, %v227_v56  ;;  %v229_v9 = vmul.f32 0.1, %v225_v6 }
  0x69   :  { %v232_v2 = vadd.f32 0.5, %v228_v4 }
  0x6a   :  { %v240_v0 = vrot.slane %v231_v52, 4  ;;  %v233_v62 = vadd.f32 0.5, %v229_v9 }
  0x6c   :  { %v243_v5 = vsel %vm242_vm11, %v230_v48, %v240_v0  ;;  %v241_v11 = vrot.slane %v233_v62, 4 }
  0x6d   :  { %v247_v8 = vadd.f32 %v243_v5, %v234_v61 }
  0x6e   :  { %v244_v63 = vsel %vm242_vm11, %v232_v2, %v241_v11 }
  0x6f   :  { %249 = vst [vmem:[#allocation7] sm:$0xff] %v247_v8  ;;  %v248_v7 = vadd.f32 %v244_v63, %v235_v10 }
  0x71   :  { %250 = vst [vmem:[#allocation7 + $0x8] sm:$0xff] %v248_v7 }
  0x72   :  { %261 = dma.vmem_to_hbm [thread:$0]  %s257_s1, 256, %s259_s19, [#allocation6]  }
  0x73   :  { %344 = dma.done.wait [#allocation6], 256  }
  0x74   :  { %345 = vsyncadd [#allocation6], 4294967040 }
  0x75   :  { %266 = vsyncpa [#allocation5], 1 }
  0x76   :  { %267 = vsyncpa [#allocation6], 1 }

</bundles_post_ra>
